<compile_context>
chip_gen: v6e
topology: v6e:2x2x1
jax: 0.10.0
libtpu: 0.0.40
codegen_flags: <defaults>
</compile_context>

<pallas_src>
import jax
import jax.numpy as jnp
from jax.experimental import pallas as pl
from jax.experimental.pallas import tpu as pltpu


# ---------------------------------------------------------------------------
# Fused kernel, one grid step per (B, tile_n) score tile:
#   proj   = q @ Wq_eff + [head|tail|time] @ W_htt + b_eff          (f32)
#   scores = proj(bf16) @ emb_tile                                  (f32)
# where emb_tile is a lane-dense (D, tile_n) bf16 slab of the pre-transposed
# entity/time table.  The projection recompute per step is trivial MXU work
# hidden under the HBM DMA of the table tile.
# ---------------------------------------------------------------------------
def _qa_scores_kernel(q_ref, wq_ref, htt_ref, whtt_ref, b_ref, embt_ref,
                      scores_ref):
    proj = (jnp.dot(q_ref[...], wq_ref[...],
                    preferred_element_type=jnp.float32)
            + jnp.dot(htt_ref[...], whtt_ref[...],
                      preferred_element_type=jnp.float32)
            + b_ref[...])                                   # (B, D) f32
    scores_ref[...] = jnp.dot(proj.astype(jnp.bfloat16), embt_ref[...],
                              preferred_element_type=jnp.float32)


def _choose_tile_n(n_total, d, b,
                   target_tile_bytes=2 << 20,    # ~2 MiB streamed table tile
                   vmem_budget=12 << 20):        # safe under v5e 16 MiB default
    """Pick a 128-aligned tile over the N (table-row) axis."""
    n_pad128 = pl.cdiv(n_total, 128) * 128
    tile = max(128, (target_tile_bytes // (2 * d)) // 128 * 128)
    # double-buffered bf16 table tile + double-buffered f32 output tile
    per_col = 2 * (2 * d) + 2 * (4 * b)
    tile = min(tile, max(128, (vmem_budget // per_col) // 128 * 128))
    # prefer >= 2 grid steps so both v7x TensorCores get work
    if n_pad128 >= 256:
        tile = min(tile, max(128, (n_pad128 // 2) // 128 * 128))
    tile = max(128, min(tile, n_pad128))
    return int(tile)


def prepare_params(params, *, batch_size=8):
    """One-time parameter prep (weight folding + table cast/transpose/pad).

    Folds the relation branch through final_linear:
        rel @ W_rel = q @ (w_lin @ W_rel) + b_lin @ W_rel
    and stacks the head/tail/time weight rows so the in-kernel projection is
    two matmuls + bias.  The entity/time table is stored once as a
    (D, N_pad) bf16 array (zero-padded to a multiple of tile_n) for the
    streaming scores matmul; the f32 table is kept for embedding gathers.
    """
    emb = params["entity_time_embedding"]                 # (N_total, D) f32
    n_total, d = emb.shape

    w_lin = params["w_lin"]                               # (768, D)
    b_lin = params["b_lin"].reshape(1, d)                 # (1, D)
    w_fin = params["w_fin"]                               # (4D, D): h|rel|t|tm
    b_fin = params["b_fin"].reshape(1, d)                 # (1, D)

    w_rel = w_fin[d:2 * d, :]                             # (D, D)
    wq_eff = w_lin @ w_rel                                # (768, D)
    b_eff = b_lin @ w_rel + b_fin                         # (1, D)
    w_htt = jnp.concatenate(
        [w_fin[0:d, :], w_fin[2 * d:3 * d, :], w_fin[3 * d:4 * d, :]],
        axis=0)                                           # (3D, D)

    tile_n = _choose_tile_n(n_total, d, batch_size)
    n_pad = pl.cdiv(n_total, tile_n) * tile_n

    emb_t = emb.T.astype(jnp.bfloat16)                    # (D, N_total) bf16
    if n_pad > n_total:
        emb_t = jnp.pad(emb_t, ((0, 0), (0, n_pad - n_total)))

    return {
        "emb": emb,                # f32 table for nn.Embedding gathers
        "emb_t_bf16": emb_t,       # (D, N_pad) bf16, streamed by the kernel
        "wq_eff": wq_eff,
        "b_eff": b_eff,
        "w_htt": w_htt,
        "tile_n": tile_n,
        "n_total": n_total,
        "n_pad": n_pad,
    }


def qa_lm_forward(question_cls, heads, tails, times, prepared):
    """Embedding gathers in glue, then one fused streaming pallas_call."""
    emb = prepared["emb"]
    emb_t = prepared["emb_t_bf16"]
    wq_eff = prepared["wq_eff"]
    w_htt = prepared["w_htt"]
    b_eff = prepared["b_eff"]
    tile_n = prepared["tile_n"]
    n_total = prepared["n_total"]
    n_pad = prepared["n_pad"]

    d = emb.shape[1]
    b, s_dim = question_cls.shape
    grid_n = n_pad // tile_n

    # nn.Embedding lookups (gathers stay in glue, f32).
    head_e = jnp.take(emb, heads, axis=0)                 # (B, D)
    tail_e = jnp.take(emb, tails, axis=0)                 # (B, D)
    time_e = jnp.take(emb, times, axis=0)                 # (B, D)
    htt = jnp.concatenate([head_e, tail_e, time_e], axis=-1)   # (B, 3D)

    # VMEM accounting: residents (x2 buffers) + streamed table/output tiles.
    resident_bytes = 2 * 4 * (question_cls.size + wq_eff.size + htt.size
                              + w_htt.size + b_eff.size)
    stream_bytes = 2 * (2 * d * tile_n) + 2 * (4 * b * tile_n)
    vmem_limit = int(min(max(2 * (resident_bytes + stream_bytes), 16 << 20),
                         48 << 20))

    cost = pl.CostEstimate(
        flops=2 * b * d * n_pad + grid_n * 2 * b * (s_dim + 3 * d) * d,
        transcendentals=0,
        bytes_accessed=(d * n_pad * 2 + b * n_pad * 4
                        + 4 * (question_cls.size + wq_eff.size + htt.size
                               + w_htt.size + b_eff.size)))

    resident = lambda shape: pl.BlockSpec(shape, lambda n: (0, 0))

    scores_pad = pl.pallas_call(
        _qa_scores_kernel,
        out_shape=jax.ShapeDtypeStruct((b, n_pad), jnp.float32),
        grid=(grid_n,),
        in_specs=[
            resident((b, s_dim)),        # question CLS embedding  (f32)
            resident((s_dim, d)),        # folded relation weight  (f32)
            resident((b, 3 * d)),        # [head|tail|time] embeddings (f32)
            resident((3 * d, d)),        # stacked head/tail/time weights
            resident((1, d)),            # folded bias
            pl.BlockSpec((d, tile_n), lambda n: (0, n)),   # streamed table
        ],
        out_specs=pl.BlockSpec((b, tile_n), lambda n: (0, n)),
        compiler_params=pltpu.CompilerParams(
            dimension_semantics=("parallel",),             # megacore on v7x
            vmem_limit_bytes=vmem_limit),
        cost_estimate=cost,
    )(question_cls, wq_eff, htt, w_htt, b_eff, emb_t)

    return scores_pad[:, :n_total]


def init_params(key, num_entities, num_times, tkbc_dim, sentence_dim=768):
    """Deterministic synthetic parameters matching QA_lm.__init__ shapes."""
    keys = jax.random.split(key, 5)
    n_total = num_entities + num_times
    scale = 0.02
    return {
        # entity_time_embedding.weight : (num_entities + num_times, D)
        "entity_time_embedding":
            scale * jax.random.normal(keys[0], (n_total, tkbc_dim), jnp.float32),
        # self.linear : 768 -> D      (stored as (in, out))
        "w_lin": scale * jax.random.normal(keys[1], (sentence_dim, tkbc_dim), jnp.float32),
        "b_lin": scale * jax.random.normal(keys[2], (tkbc_dim,), jnp.float32),
        # self.final_linear : 4D -> D (stored as (in, out))
        "w_fin": scale * jax.random.normal(keys[3], (4 * tkbc_dim, tkbc_dim), jnp.float32),
        "b_fin": scale * jax.random.normal(keys[4], (tkbc_dim,), jnp.float32),
    }


if __name__ == "__main__":
    key = jax.random.PRNGKey(0)
    k_param, k_hid, k_h, k_t, k_tm = jax.random.split(key, 5)

    # Small shapes consistent with the module.  N_total is a non-multiple of
    # 128 to exercise the table padding + multi-tile grid path.
    B = 8               # batch
    SEQ = 8             # question token length (only CLS is used)
    SENT_DIM = 768      # sentence_embedding_dim (hardcoded in module)
    D = 32              # tkbc_embedding_dim
    NUM_ENT = 300
    NUM_TIME = 50
    N_TOTAL = NUM_ENT + NUM_TIME

    params = init_params(k_param, NUM_ENT, NUM_TIME, D, SENT_DIM)
    prepared = prepare_params(params, batch_size=B)       # one-time prep

    # Synthetic LM last hidden states (stand-in for DistilBert output[0]).
    lm_last_hidden = 0.1 * jax.random.normal(k_hid, (B, SEQ, SENT_DIM), jnp.float32)
    question_cls = lm_last_hidden[:, 0, :]     # getQuestionEmbedding -> CLS token

    heads = jax.random.randint(k_h, (B,), 0, NUM_ENT)
    tails = jax.random.randint(k_t, (B,), 0, NUM_ENT)
    times = jax.random.randint(k_tm, (B,), NUM_ENT, N_TOTAL)

    scores = qa_lm_forward(question_cls, heads, tails, times, prepared)
    scores = jax.block_until_ready(scores)

    # Pure-JAX f32 reference of the original (unfolded) module math.
    emb = params["entity_time_embedding"]
    head_e = jnp.take(emb, heads, axis=0)
    tail_e = jnp.take(emb, tails, axis=0)
    time_e = jnp.take(emb, times, axis=0)
    rel = question_cls @ params["w_lin"] + params["b_lin"]
    out = (jnp.concatenate([head_e, rel, tail_e, time_e], axis=-1) @ params["w_fin"]
           + params["b_fin"])
    ref = out @ emb.T

    assert scores.shape == (B, N_TOTAL)
    # bf16 table + bf16 query in the streaming matmul -> loosened tolerance
    # vs. the pure-f32 reference (fine for ranking / softmax downstream).
    err = float(jnp.max(jnp.abs(scores - ref)))
    assert jnp.allclose(scores, ref, atol=5e-4, rtol=2e-2), err

    print("KERNEL_OK")
</pallas_src>

<mosaic_0001>
module attributes {stable_mosaic.version = 11 : i64} {
  func.func @_qa_scores_kernel(%arg0: i32, %arg1: memref<8x768xf32, #tpu.memory_space<vmem>>, %arg2: memref<768x32xf32, #tpu.memory_space<vmem>>, %arg3: memref<8x96xf32, #tpu.memory_space<vmem>>, %arg4: memref<96x32xf32, #tpu.memory_space<vmem>>, %arg5: memref<1x32xf32, #tpu.memory_space<vmem>>, %arg6: memref<32x128xbf16, #tpu.memory_space<vmem>>, %arg7: memref<8x128xf32, #tpu.memory_space<vmem>>) attributes {dimension_semantics = [#tpu.dimension_semantics<parallel>], iteration_bounds = array<i64: 3>, scalar_prefetch = 0 : i64, scratch_operands = 0 : i64, tpu.core_type = #tpu.core_type<tc>, window_params = [{pipeline_mode = #tpu.pipeline_mode<synchronous>, transform_indices = @transform_0, window_bounds = array<i64: 8, 768>}, {pipeline_mode = #tpu.pipeline_mode<synchronous>, transform_indices = @transform_1, window_bounds = array<i64: 768, 32>}, {pipeline_mode = #tpu.pipeline_mode<synchronous>, transform_indices = @transform_2, window_bounds = array<i64: 8, 96>}, {pipeline_mode = #tpu.pipeline_mode<synchronous>, transform_indices = @transform_3, window_bounds = array<i64: 96, 32>}, {pipeline_mode = #tpu.pipeline_mode<synchronous>, transform_indices = @transform_4, window_bounds = array<i64: 1, 32>}, {transform_indices = @transform_5, window_bounds = array<i64: 32, 128>}, {transform_indices = @transform_6, window_bounds = array<i64: 8, 128>}]} {
    %c0 = arith.constant 0 : index
    %c0_0 = arith.constant 0 : index
    %0 = vector.load %arg1[%c0, %c0_0] : memref<8x768xf32, #tpu.memory_space<vmem>>, vector<8x768xf32>
    %c0_1 = arith.constant 0 : index
    %c0_2 = arith.constant 0 : index
    %1 = vector.load %arg2[%c0_1, %c0_2] : memref<768x32xf32, #tpu.memory_space<vmem>>, vector<768x32xf32>
    %cst = arith.constant dense<0.000000e+00> : vector<8x32xf32>
    %2 = tpu.matmul %0, %1, %cst {dimension_numbers = #tpu.dot_dimension_numbers<[1], [0], [0], [1], [0, 0, 1, 1], [], []>} : vector<8x768xf32>, vector<768x32xf32>, vector<8x32xf32> -> vector<8x32xf32>
    %c0_3 = arith.constant 0 : index
    %c0_4 = arith.constant 0 : index
    %3 = vector.load %arg3[%c0_3, %c0_4] : memref<8x96xf32, #tpu.memory_space<vmem>>, vector<8x96xf32>
    %c0_5 = arith.constant 0 : index
    %c0_6 = arith.constant 0 : index
    %4 = vector.load %arg4[%c0_5, %c0_6] : memref<96x32xf32, #tpu.memory_space<vmem>>, vector<96x32xf32>
    %cst_7 = arith.constant dense<0.000000e+00> : vector<8x32xf32>
    %5 = tpu.matmul %3, %4, %cst_7 {dimension_numbers = #tpu.dot_dimension_numbers<[1], [0], [0], [1], [0, 0, 1, 1], [], []>} : vector<8x96xf32>, vector<96x32xf32>, vector<8x32xf32> -> vector<8x32xf32>
    %6 = arith.addf %2, %5 : vector<8x32xf32>
    %c0_8 = arith.constant 0 : index
    %c0_9 = arith.constant 0 : index
    %7 = vector.load %arg5[%c0_8, %c0_9] : memref<1x32xf32, #tpu.memory_space<vmem>>, vector<1x32xf32>
    %8 = vector.broadcast %7 : vector<1x32xf32> to vector<8x32xf32>
    %9 = arith.addf %6, %8 : vector<8x32xf32>
    %10 = arith.truncf %9 : vector<8x32xf32> to vector<8x32xbf16>
    %c0_10 = arith.constant 0 : index
    %c0_11 = arith.constant 0 : index
    %11 = vector.load %arg6[%c0_10, %c0_11] : memref<32x128xbf16, #tpu.memory_space<vmem>>, vector<32x128xbf16>
    %cst_12 = arith.constant dense<0.000000e+00> : vector<8x128xf32>
    %12 = tpu.matmul %10, %11, %cst_12 {dimension_numbers = #tpu.dot_dimension_numbers<[1], [0], [0], [1], [0, 0, 1, 1], [], []>} : vector<8x32xbf16>, vector<32x128xbf16>, vector<8x128xf32> -> vector<8x128xf32>
    %c0_13 = arith.constant 0 : index
    %c0_14 = arith.constant 0 : index
    %13 = vector.load %arg7[%c0_13, %c0_14] : memref<8x128xf32, #tpu.memory_space<vmem>>, vector<8x128xf32>
    tpu.vector_store %arg7[%c0_13, %c0_14], %12 {strides = array<i32>} : memref<8x128xf32, #tpu.memory_space<vmem>>, vector<8x128xf32>,
    return
  }
  func.func @transform_0(%arg0: i32) -> (i32, i32) {
    %c0_i32 = arith.constant 0 : i32
    %c0_i32_0 = arith.constant 0 : i32
    %c0_i32_1 = arith.constant 0 : i32
    return %c0_i32, %c0_i32_0 : i32, i32
  }
  func.func @transform_1(%arg0: i32) -> (i32, i32) {
    %c0_i32 = arith.constant 0 : i32
    %c0_i32_0 = arith.constant 0 : i32
    %c0_i32_1 = arith.constant 0 : i32
    return %c0_i32, %c0_i32_0 : i32, i32
  }
  func.func @transform_2(%arg0: i32) -> (i32, i32) {
    %c0_i32 = arith.constant 0 : i32
    %c0_i32_0 = arith.constant 0 : i32
    %c0_i32_1 = arith.constant 0 : i32
    return %c0_i32, %c0_i32_0 : i32, i32
  }
  func.func @transform_3(%arg0: i32) -> (i32, i32) {
    %c0_i32 = arith.constant 0 : i32
    %c0_i32_0 = arith.constant 0 : i32
    %c0_i32_1 = arith.constant 0 : i32
    return %c0_i32, %c0_i32_0 : i32, i32
  }
  func.func @transform_4(%arg0: i32) -> (i32, i32) {
    %c0_i32 = arith.constant 0 : i32
    %c0_i32_0 = arith.constant 0 : i32
    %c0_i32_1 = arith.constant 0 : i32
    return %c0_i32, %c0_i32_0 : i32, i32
  }
  func.func @transform_5(%arg0: i32) -> (i32, i32) {
    %c0_i32 = arith.constant 0 : i32
    %c0_i32_0 = arith.constant 0 : i32
    return %c0_i32, %arg0 : i32, i32
  }
  func.func @transform_6(%arg0: i32) -> (i32, i32) {
    %c0_i32 = arith.constant 0 : i32
    %c0_i32_0 = arith.constant 0 : i32
    return %c0_i32, %arg0 : i32, i32
  }
}

</mosaic_0001>

<bundles_post_ra>
// kernel: tpu_custom_call.1
= control target key start
LH: loop header
LB: loop body
LE: loop exit
PB: predicated region body
PF: predicated region fallthrough
CT: control target
= control target key end

     0   :  { %11 = vsyncpa [#allocation4], 0  ;;  %s1642_s0 = inlined_call_operand.vmem [shape: f32[8,768], index: 0, kind: input, shape index: {}]   ;;  %s1643_s1 = inlined_call_operand.vmem [shape: f32[768,32], index: 1, kind: input, shape index: {}]   ;;  %s1644_s2 = inlined_call_operand.vmem [shape: f32[8,96], index: 2, kind: input, shape index: {}]   ;;  %s1645_s3 = inlined_call_operand.vmem [shape: f32[96,32], index: 3, kind: input, shape index: {}]   ;;  %s1646_s4 = inlined_call_operand.vmem [shape: f32[1,32], index: 4, kind: input, shape index: {}]   ;;  %s1647_s5 = inlined_call_operand.vmem [shape: bf16[32,384], index: 5, kind: input, shape index: {}]   ;;  %s1648_s6 = inlined_call_operand.hbm [shape: f32[8,384], index: 6, kind: output, shape index: {}]  }
   0x1   :  { %13 = vsyncpa [#allocation4 + $0x1], 0  ;;  %s1170_s21 = smov 0   ;;  %s1172_s22 = smov 0  }
   0x2   :  { %s1174_s23 = smov 0   ;;  %s1176_s24 = smov 0  }
   0x3 LB: > { %s853_s25 = sadd.s32 4294967295, %s1130_s24   ;;  %s854_s26 = sadd.s32 4294967294, %s1130_s24   ;;  %s1130_s24 = sphi %s1176_s24, %s1654_s24   ;;  %s1126_s23 = sphi %s1174_s23, %s1653_s23   ;;  %s1122_s22 = sphi %s1172_s22, %s1652_s22   ;;  %s1118_s21 = sphi %s1170_s21, %s1651_s21  }
   0x4   : > { %s1193_s27 = sadd.s32 1, %s1130_s24   ;;  %s131_s28 = sadd.s32 1, %s1126_s23 }
   0x5   : > { %s128_s29 = ssub.s32 %s1130_s24, %s1193_s27  ;;  %p138_p0 = scmp.ne.s32.totalorder %s1126_s23, %s1122_s22 }
   0x6   : > { %p129_p1 = scmp.eq.s32.totalorder %s128_s29, 0  ;;  %p139_p2 = scmp.eq.s32.totalorder %s1130_s24, 0 }
   0x7   : > { %p168_p3 = scmp.eq.s32.totalorder %s853_s25, 2  ;;  %p173_p4 = scmp.ne.s32.totalorder %s1122_s22, %s1118_s21 }
   0x8   : > { %s1206_s30 = scalar_select %p129_p1, %s1126_s23, %s131_s28  }
   0x9   : > { %p140_p5 = por %p139_p2, %p138_p0  ;;  %p1208_p6 = por %p168_p3, %p138_p0 }
   0xa   : > { %p174_p7 = scmp.eq.s32.totalorder %s854_s26, 2  ;;  %p856_p9 = scmp.ge.s32.totalorder %s1130_s24, 3 }
   0xc   : > { %p1212_p8 = por %p174_p7, %p173_p4  ;;  %205 = sbr.rel (%p856_p9) target bundleno = 23 (0x17), region = 36 }
  0x11   : > { %208 = sbr.rel (!%p140_p5) target bundleno = 23 (0x17), region = 40  ;;  %s210_s9 = sand.u32 (%p140_p5), 1, %s1126_s23  }
  0x12   : > { %s858_s10 = sshll.u32 (%p140_p5), %s1130_s24, 2  ;;  %s857_s11 = sshll.u32 (%p140_p5), %s210_s9, 4 }
  0x13   : > { %s214_s14 = scalar_lea.vmem (%p140_p5), %s1647_s5, %s858_s10  ;;  %s212_s15 = scalar_lea.vmem (%p140_p5), [#allocation2], %s857_s11 }
  0x14   : > { %v231_v0 = vld [vmem:[%s214_s14] sm:$0xf] (%p140_p5)  ;;  %v233_v1 = vld [vmem:[%s214_s14 + $0xc] sm:$0xf] (%p140_p5)  ;;  %v235_v2 = vld [vmem:[%s214_s14 + $0x18] sm:$0xf] (%p140_p5) }
  0x15   : > { %232 = vst [vmem:[%s212_s15] sm:$0xf] (%p140_p5), %v231_v0  ;;  %234 = vst [vmem:[%s212_s15 + $0x4] sm:$0xf] (%p140_p5), %v233_v1  ;;  %v237_v3 = vld [vmem:[%s214_s14 + $0x24] sm:$0xf] (%p140_p5) }
  0x16   : > { %236 = vst [vmem:[%s212_s15 + $0x8] sm:$0xf] %v235_v2  ;;  %238 = vst [vmem:[%s212_s15 + $0xc] sm:$0xf] %v237_v3 }
  0x17 PF: > { %p859_p10 = scmp.ge.s32.totalorder %s1130_s24, 1  ;;  %p269_p11 = scmp.lt.s32.totalorder %s1130_s24, 4 }
  0x19   : > { %p270_p12 = pnand %p859_p10, %p269_p11 }
  0x1a   : > { %s1587_s26 = sand.u32 (!%p270_p12), 1, %s1122_s22   ;;  %s868_s14 = sshll.u32 (!%p270_p12), %s853_s25, 7 }
  0x1b   : > { %273 = sbr.rel (%p270_p12) target bundleno = 512 (0x200), region = 81  ;;  %s860_s28 = sshll.u32 (!%p270_p12), %s1587_s26, 4 }
  0x1c   : > { %s278_s29 = scalar_lea.vmem (!%p270_p12), [#allocation2], %s860_s28  ;;  %s861_s11 = sshll.u32 (!%p270_p12), %s1587_s26, 3 }
  0x1d   : > { %s304_s12 = scalar_lea.vmem (!%p270_p12), [#allocation3], %s861_s11  ;;  %s1602_s17 = scalar_lea.hbm (!%p270_p12), %s1648_s6, %s868_s14 }
  0x1e   : > { %s789_s13 = sshll.u32 (!%p270_p12), %s304_s12, 4  ;;  %s776_s18 = scalar_lea.sflag (!%p270_p12), [#allocation4], %s1587_s26  ;;  %s1597_s13 = int_to_ptr.vmem [resolvable:$true] %s789_s13 }
  0x1f   : > { %s1070_s19 = scalar_lea.vmem (!%p270_p12), %s1597_s13, 128  ;;  %s1134_s25 = smov (!%p270_p12), [#allocation3]  }
  0x20   : > { %v343_v4 = vld [vmem:[%s1643_s1 + $0xf8] sm:$0xff]  ;;  %v1132_v7 = vmov 0.0   ;;  %v342_v8 = vld [vmem:[%s1643_s1 + $0xf0] sm:$0xff]  ;;  %v341_v11 = vld [vmem:[%s1643_s1 + $0xe8] sm:$0xff]  ;;  %vm421_vm0 = vcmask 785408   ;;  %vm1133_vm1 = vmmov 0   ;;  %p1071_p13 = scmp.ne.s32.totalorder %s1597_s13, %s1070_s19 }
  0x21   : > { %v420_v5 = vld [vmem:[%s1645_s3 + $0x58] sm:$0xff]  ;;  %992 = vmatprep.subr.mxu0 %v1132_v7  ;;  %884 = vmatprep.subr.mxu1 %v343_v4  ;;  %v419_v9 = vld [vmem:[%s1645_s3 + $0x50] sm:$0xff]  ;;  %v418_v12 = vld [vmem:[%s1645_s3 + $0x48] sm:$0xff]  ;;  %vm730_vm2 = vcmask 261120   ;;  %s1074_s20 = sshll.u32 %s1134_s25, 4  ;;  %s1075_s20 = int_to_ptr.vmem [resolvable:$false] %s1074_s20 }
  0x22   : > { %v327_v6 = vld [vmem:[%s1643_s1 + $0x78] sm:$0xff]  ;;  %v326_v10 = vld [vmem:[%s1643_s1 + $0x70] sm:$0xff]  ;;  %993 = vmatpush3.msra.mxu0 %v420_v5  ;;  %v325_v13 = vld [vmem:[%s1643_s1 + $0x68] sm:$0xff]  ;;  %1016 = vmatprep.mubr.msk.f32.mxu0 %vm1133_vm1, %v1132_v7  ;;  %p1072_p0 = pnand %p1071_p13, %p1208_p6  ;;  %s1076_s28 = scalar_lea.vmem %s1075_s20, 256 }
  0x23   : > { %885 = vmatpush3.msra.mxu1 %v327_v6  ;;  %994 = vmatprep.subr.mxu0 %v1132_v7  ;;  %v340_v14 = vld [vmem:[%s1643_s1 + $0xe0] sm:$0xff]  ;;  %v339_v17 = vld [vmem:[%s1643_s1 + $0xd8] sm:$0xff]  ;;  %v338_v20 = vld [vmem:[%s1643_s1 + $0xd0] sm:$0xff]  ;;  %p1077_p2 = scmp.lt.s32.totalorder %s1597_s13, %s1075_s20  ;;  %p1078_p3 = scmp.lt.s32.totalorder %s1076_s28, %s1070_s19 }
  0x24   : > { %886 = vmatprep.subr.mxu1 %v342_v8  ;;  %995 = vmatpush3.msra.mxu0 %v419_v9  ;;  %v417_v15 = vld [vmem:[%s1645_s3 + $0x40] sm:$0xff]  ;;  %v416_v18 = vld [vmem:[%s1645_s3 + $0x38] sm:$0xff]  ;;  %v415_v21 = vld [vmem:[%s1645_s3 + $0x30] sm:$0xff]  ;;  %p1073_p1 = pneg %p1072_p0 }
  0x25   : > { %887 = vmatpush3.msra.mxu1 %v326_v10  ;;  %996 = vmatprep.subr.mxu0 %v1132_v7  ;;  %v324_v16 = vld [vmem:[%s1643_s1 + $0x60] sm:$0xff]  ;;  %v323_v19 = vld [vmem:[%s1643_s1 + $0x58] sm:$0xff]  ;;  %v322_v22 = vld [vmem:[%s1643_s1 + $0x50] sm:$0xff]  ;;  %p1079_p4 = por %p1078_p3, %p1077_p2 }
  0x26   : > { %888 = vmatprep.subr.mxu1 %v341_v11  ;;  %997 = vmatpush3.msra.mxu0 %v418_v12  ;;  %v337_v23 = vld [vmem:[%s1643_s1 + $0xc8] sm:$0xff]  ;;  %v336_v26 = vld [vmem:[%s1643_s1 + $0xc0] sm:$0xff]  ;;  %v335_v29 = vld [vmem:[%s1643_s1 + $0xb8] sm:$0xff] }
  0x27   : > { %889 = vmatpush3.msra.mxu1 %v325_v13  ;;  %998 = vmatprep.subr.mxu0 %v1132_v7  ;;  %v414_v24 = vld [vmem:[%s1645_s3 + $0x28] sm:$0xff]  ;;  %v413_v27 = vld [vmem:[%s1645_s3 + $0x20] sm:$0xff]  ;;  %v412_v30 = vld [vmem:[%s1645_s3 + $0x18] sm:$0xff]  ;;  %p1080_p5 = pnand %p1079_p4, %p1073_p1 }
  0x28   : > { %890 = vmatprep.subr.mxu1 %v340_v14  ;;  %999 = vmatpush3.msra.mxu0 %v417_v15  ;;  %v321_v25 = vld [vmem:[%s1643_s1 + $0x48] sm:$0xff]  ;;  %v320_v28 = vld [vmem:[%s1643_s1 + $0x40] sm:$0xff]  ;;  %v319_v31 = vld [vmem:[%s1643_s1 + $0x38] sm:$0xff] }
  0x29   : > { %891 = vmatpush3.msra.mxu1 %v324_v16  ;;  %1000 = vmatprep.subr.mxu0 %v1132_v7  ;;  %v334_v32 = vld [vmem:[%s1643_s1 + $0xb0] sm:$0xff]  ;;  %v333_v35 = vld [vmem:[%s1643_s1 + $0xa8] sm:$0xff]  ;;  %v332_v38 = vld [vmem:[%s1643_s1 + $0xa0] sm:$0xff] }
  0x2a   : > { %892 = vmatprep.subr.mxu1 %v339_v17  ;;  %1001 = vmatpush3.msra.mxu0 %v416_v18  ;;  %v411_v33 = vld [vmem:[%s1645_s3 + $0x10] sm:$0xff]  ;;  %v410_v36 = vld [vmem:[%s1645_s3 + $0x8] sm:$0xff]  ;;  %v409_v39 = vld [vmem:[%s1645_s3] sm:$0xff] }
  0x2b   : > { %893 = vmatpush3.msra.mxu1 %v323_v19  ;;  %1002 = vmatprep.subr.mxu0 %v1132_v7  ;;  %v318_v34 = vld [vmem:[%s1643_s1 + $0x30] sm:$0xff]  ;;  %v317_v37 = vld [vmem:[%s1643_s1 + $0x28] sm:$0xff]  ;;  %v316_v40 = vld [vmem:[%s1643_s1 + $0x20] sm:$0xff] }
  0x2c   : > { %894 = vmatprep.subr.mxu1 %v338_v20  ;;  %1003 = vmatpush3.msra.mxu0 %v415_v21  ;;  %v331_v41 = vld [vmem:[%s1643_s1 + $0x98] sm:$0xff]  ;;  %v408_v43 = vld [vmem:[%s1644_s2] sm:$0xff]  ;;  %v330_v46 = vld [vmem:[%s1643_s1 + $0x90] sm:$0xff] }
  0x2d   : > { %895 = vmatpush3.msra.mxu1 %v322_v22  ;;  %1004 = vmatprep.subr.mxu0 %v1132_v7  ;;  %v375_v42 = vld [vmem:[%s1643_s1 + $0x1f8] sm:$0xff]  ;;  %v374_v47 = vld [vmem:[%s1643_s1 + $0x1f0] sm:$0xff]  ;;  %v329_v50 = vld [vmem:[%s1643_s1 + $0x88] sm:$0xff] }
  0x2e   : > { %896 = vmatprep.subr.mxu1 %v337_v23  ;;  %1005 = vmatpush3.msra.mxu0 %v414_v24  ;;  %v315_v44 = vld [vmem:[%s1643_s1 + $0x18] sm:$0xff]  ;;  %v314_v48 = vld [vmem:[%s1643_s1 + $0x10] sm:$0xff]  ;;  %v373_v51 = vld [vmem:[%s1643_s1 + $0x1e8] sm:$0xff] }
  0x2f   : > { %897 = vmatpush3.msra.mxu1 %v321_v25  ;;  %1006 = vmatprep.subr.mxu0 %v1132_v7  ;;  %v359_v45 = vld [vmem:[%s1643_s1 + $0x178] sm:$0xff]  ;;  %v358_v49 = vld [vmem:[%s1643_s1 + $0x170] sm:$0xff]  ;;  %v313_v52 = vld [vmem:[%s1643_s1 + $0x8] sm:$0xff] }
  0x30   : > { %898 = vmatprep.subr.mxu1 %v336_v26  ;;  %1007 = vmatpush3.msra.mxu0 %v413_v27  ;;  %v357_v53 = vld [vmem:[%s1643_s1 + $0x168] sm:$0xff]  ;;  %v328_v54 = vld [vmem:[%s1643_s1 + $0x80] sm:$0xff]  ;;  %v371_v60 = vld [vmem:[%s1643_s1 + $0x1d8] sm:$0xff] }
  0x31   : > { %899 = vmatpush3.msra.mxu1 %v320_v28  ;;  %1008 = vmatprep.subr.mxu0 %v1132_v7  ;;  %v372_v55 = vld [vmem:[%s1643_s1 + $0x1e0] sm:$0xff]  ;;  %v307_v57 = vld [vmem:[%s1642_s0 + $0x8] sm:$0xff]  ;;  %v407_v61 = vld [vmem:[%s1643_s1 + $0x2f8] sm:$0xff] }
  0x32   : > { %900 = vmatprep.subr.mxu1 %v335_v29  ;;  %1009 = vmatpush3.msra.mxu0 %v412_v30  ;;  %v312_v56 = vld [vmem:[%s1643_s1] sm:$0xff]  ;;  %v355_v62 = vld [vmem:[%s1643_s1 + $0x158] sm:$0xff]  ;;  %v370_v0 = vld [vmem:[%s1643_s1 + $0x1d0] sm:$0xff] }
  0x33   : > { %901 = vmatpush3.msra.mxu1 %v319_v31  ;;  %1010 = vmatprep.subr.mxu0 %v1132_v7  ;;  %v356_v58 = vld [vmem:[%s1643_s1 + $0x160] sm:$0xff]  ;;  %v391_v63 = vld [vmem:[%s1643_s1 + $0x278] sm:$0xff]  ;;  %v406_v1 = vld [vmem:[%s1643_s1 + $0x2f0] sm:$0xff] }
  0x34   : > { %902 = vmatprep.subr.mxu1 %v334_v32  ;;  %1011 = vmatpush3.msra.mxu0 %v411_v33  ;;  %v306_v59 = vld [vmem:[%s1642_s0] sm:$0xff]  ;;  %v354_v2 = vld [vmem:[%s1643_s1 + $0x150] sm:$0xff]  ;;  %v369_v4 = vld [vmem:[%s1643_s1 + $0x1c8] sm:$0xff] }
  0x35   : > { %903 = vmatpush3.msra.mxu1 %v318_v34  ;;  %1012 = vmatprep.subr.mxu0 %v1132_v7  ;;  %v390_v3 = vld [vmem:[%s1643_s1 + $0x270] sm:$0xff]  ;;  %v405_v5 = vld [vmem:[%s1643_s1 + $0x2e8] sm:$0xff]  ;;  %v368_v9 = vld [vmem:[%s1643_s1 + $0x1c0] sm:$0xff] }
  0x36   : > { %904 = vmatprep.subr.mxu1 %v333_v35  ;;  %1013 = vmatpush3.msra.mxu0 %v410_v36  ;;  %v353_v6 = vld [vmem:[%s1643_s1 + $0x148] sm:$0xff]  ;;  %v404_v10 = vld [vmem:[%s1643_s1 + $0x2e0] sm:$0xff]  ;;  %v367_v13 = vld [vmem:[%s1643_s1 + $0x1b8] sm:$0xff] }
  0x37   : > { %905 = vmatpush3.msra.mxu1 %v317_v37  ;;  %1014 = vmatprep.subr.mxu0 %v1132_v7  ;;  %v389_v8 = vld [vmem:[%s1643_s1 + $0x268] sm:$0xff]  ;;  %v352_v11 = vld [vmem:[%s1643_s1 + $0x140] sm:$0xff]  ;;  %v403_v14 = vld [vmem:[%s1643_s1 + $0x2d8] sm:$0xff] }
  0x38   : > { %906 = vmatprep.subr.mxu1 %v332_v38  ;;  %1015 = vmatpush3.msra.mxu0 %v409_v39  ;;  %v388_v12 = vld [vmem:[%s1643_s1 + $0x260] sm:$0xff]  ;;  %v351_v15 = vld [vmem:[%s1643_s1 + $0x138] sm:$0xff]  ;;  %v366_v17 = vld [vmem:[%s1643_s1 + $0x1b0] sm:$0xff] }
  0x39   : > { %907 = vmatpush3.msra.mxu1 %v316_v40  ;;  %919 = vmatprep.subr.mxu0 %v375_v42  ;;  %v387_v16 = vld [vmem:[%s1643_s1 + $0x258] sm:$0xff]  ;;  %v402_v18 = vld [vmem:[%s1643_s1 + $0x2d0] sm:$0xff]  ;;  %v365_v21 = vld [vmem:[%s1643_s1 + $0x1a8] sm:$0xff] }
  0x3a   : > { %908 = vmatprep.subr.mxu1 %v331_v41  ;;  %1017 = vmatmul.mubr.msk.f32.vlgmr.msra.gmra.mxu0 %vm421_vm0, %v408_v43  ;;  %v350_v19 = vld [vmem:[%s1643_s1 + $0x130] sm:$0xff]  ;;  %v401_v22 = vld [vmem:[%s1643_s1 + $0x2c8] sm:$0xff]  ;;  %v364_v25 = vld [vmem:[%s1643_s1 + $0x1a0] sm:$0xff] }
  0x3b   : > { %909 = vmatpush3.msra.mxu1 %v315_v44  ;;  %920 = vmatpush3.msra.mxu0 %v359_v45  ;;  %v386_v20 = vld [vmem:[%s1643_s1 + $0x250] sm:$0xff]  ;;  %v349_v23 = vld [vmem:[%s1643_s1 + $0x128] sm:$0xff]  ;;  %v400_v26 = vld [vmem:[%s1643_s1 + $0x2c0] sm:$0xff] }
  0x3c   : > { %910 = vmatprep.subr.mxu1 %v330_v46  ;;  %921 = vmatprep.subr.mxu0 %v374_v47  ;;  %v385_v24 = vld [vmem:[%s1643_s1 + $0x248] sm:$0xff]  ;;  %v348_v27 = vld [vmem:[%s1643_s1 + $0x120] sm:$0xff]  ;;  %v363_v29 = vld [vmem:[%s1643_s1 + $0x198] sm:$0xff] }
  0x3d   : > { %911 = vmatpush3.msra.mxu1 %v314_v48  ;;  %922 = vmatpush3.msra.mxu0 %v358_v49  ;;  %v384_v28 = vld [vmem:[%s1643_s1 + $0x240] sm:$0xff]  ;;  %v399_v30 = vld [vmem:[%s1643_s1 + $0x2b8] sm:$0xff]  ;;  %v362_v33 = vld [vmem:[%s1643_s1 + $0x190] sm:$0xff] }
  0x3e   : > { %912 = vmatprep.subr.mxu1 %v329_v50  ;;  %923 = vmatprep.subr.mxu0 %v373_v51  ;;  %v347_v31 = vld [vmem:[%s1643_s1 + $0x118] sm:$0xff]  ;;  %v398_v34 = vld [vmem:[%s1643_s1 + $0x2b0] sm:$0xff]  ;;  %v361_v37 = vld [vmem:[%s1643_s1 + $0x188] sm:$0xff] }
  0x3f   : > { %913 = vmatpush3.msra.mxu1 %v313_v52  ;;  %924 = vmatpush3.msra.mxu0 %v357_v53  ;;  %v383_v32 = vld [vmem:[%s1643_s1 + $0x238] sm:$0xff]  ;;  %v346_v35 = vld [vmem:[%s1643_s1 + $0x110] sm:$0xff]  ;;  %v397_v38 = vld [vmem:[%s1643_s1 + $0x2a8] sm:$0xff] }
  0x40   : > { %914 = vmatprep.subr.mxu1 %v328_v54  ;;  %925 = vmatprep.subr.mxu0 %v372_v55  ;;  %v382_v36 = vld [vmem:[%s1643_s1 + $0x230] sm:$0xff]  ;;  %v345_v39 = vld [vmem:[%s1643_s1 + $0x108] sm:$0xff]  ;;  %v360_v41 = vld [vmem:[%s1643_s1 + $0x180] sm:$0xff] }
  0x41   : > { %915 = vmatpush3.msra.mxu1 %v312_v56  ;;  %559 = vmatprep.mubr.f32.mxu1 %v307_v57  ;;  %v381_v40 = vld [vmem:[%s1643_s1 + $0x228] sm:$0xff]  ;;  %v396_v42 = vld [vmem:[%s1643_s1 + $0x2a0] sm:$0xff]  ;;  %v309_v44 = vld [vmem:[%s1642_s0 + $0x18] sm:$0xff] }
  0x42   : > { %926 = vmatpush3.msra.mxu0 %v356_v58  ;;  %560 = vmatmul.mubr.f32.vlgmr.msra.gmra.mxu1 %v306_v59  ;;  %v344_v43 = vld [vmem:[%s1643_s1 + $0x100] sm:$0xff]  ;;  %v308_v46 = vld [vmem:[%s1642_s0 + $0x10] sm:$0xff]  ;;  %v395_v47 = vld [vmem:[%s1643_s1 + $0x298] sm:$0xff] }
  0x43   : > { %927 = vmatprep.subr.mxu0 %v371_v60  ;;  %954 = vmatprep.subr.mxu1 %v407_v61  ;;  %v380_v45 = vld [vmem:[%s1643_s1 + $0x220] sm:$0xff]  ;;  %v311_v48 = vld [vmem:[%s1642_s0 + $0x28] sm:$0xff]  ;;  %v379_v49 = vld [vmem:[%s1643_s1 + $0x218] sm:$0xff] }
  0x44   : > { %928 = vmatpush3.msra.mxu0 %v355_v62  ;;  %955 = vmatpush3.msra.mxu1 %v391_v63  ;;  %v394_v50 = vld [vmem:[%s1643_s1 + $0x290] sm:$0xff]  ;;  %v393_v52 = vld [vmem:[%s1643_s1 + $0x288] sm:$0xff]  ;;  %v392_v54 = vld [vmem:[%s1643_s1 + $0x280] sm:$0xff] }
  0x45   : > { %929 = vmatprep.subr.mxu0 %v370_v0  ;;  %956 = vmatprep.subr.mxu1 %v406_v1  ;;  %v378_v51 = vld [vmem:[%s1643_s1 + $0x210] sm:$0xff]  ;;  %v377_v53 = vld [vmem:[%s1643_s1 + $0x208] sm:$0xff]  ;;  %v376_v55 = vld [vmem:[%s1643_s1 + $0x200] sm:$0xff] }
  0x46   : > { %930 = vmatpush3.msra.mxu0 %v354_v2  ;;  %957 = vmatpush3.msra.mxu1 %v390_v3  ;;  %v310_v56 = vld [vmem:[%s1642_s0 + $0x20] sm:$0xff]  ;;  %v1068_v57 = vld [vmem:[%s278_s29 + $0x8] sm:$0xff]  }
  0x47   : > { %931 = vmatprep.subr.mxu0 %v369_v4  ;;  %958 = vmatprep.subr.mxu1 %v405_v5  ;;  %v1069_v58 = vld [vmem:[%s278_s29] sm:$0xff]  }
  0x48   : > { %932 = vmatpush3.msra.mxu0 %v353_v6  ;;  %959 = vmatpush3.msra.mxu1 %v389_v8 }
  0x49   : > { %933 = vmatprep.subr.mxu0 %v368_v9  ;;  %960 = vmatprep.subr.mxu1 %v404_v10 }
  0x4a   : > { %934 = vmatpush3.msra.mxu0 %v352_v11  ;;  %961 = vmatpush3.msra.mxu1 %v388_v12 }
  0x4b   : > { %935 = vmatprep.subr.mxu0 %v367_v13  ;;  %962 = vmatprep.subr.mxu1 %v403_v14 }
  0x4c   : > { %936 = vmatpush3.msra.mxu0 %v351_v15  ;;  %963 = vmatpush3.msra.mxu1 %v387_v16 }
  0x4d   : > { %937 = vmatprep.subr.mxu0 %v366_v17  ;;  %964 = vmatprep.subr.mxu1 %v402_v18 }
  0x4e   : > { %938 = vmatpush3.msra.mxu0 %v350_v19  ;;  %965 = vmatpush3.msra.mxu1 %v386_v20 }
  0x4f   : > { %939 = vmatprep.subr.mxu0 %v365_v21  ;;  %966 = vmatprep.subr.mxu1 %v401_v22 }
  0x50   : > { %940 = vmatpush3.msra.mxu0 %v349_v23  ;;  %967 = vmatpush3.msra.mxu1 %v385_v24 }
  0x51   : > { %941 = vmatprep.subr.mxu0 %v364_v25  ;;  %968 = vmatprep.subr.mxu1 %v400_v26 }
  0x52   : > { %942 = vmatpush3.msra.mxu0 %v348_v27  ;;  %969 = vmatpush3.msra.mxu1 %v384_v28 }
  0x53   : > { %943 = vmatprep.subr.mxu0 %v363_v29  ;;  %970 = vmatprep.subr.mxu1 %v399_v30 }
  0x54   : > { %944 = vmatpush3.msra.mxu0 %v347_v31  ;;  %971 = vmatpush3.msra.mxu1 %v383_v32 }
  0x55   : > { %945 = vmatprep.subr.mxu0 %v362_v33  ;;  %972 = vmatprep.subr.mxu1 %v398_v34 }
  0x56   : > { %946 = vmatpush3.msra.mxu0 %v346_v35  ;;  %973 = vmatpush3.msra.mxu1 %v382_v36 }
  0x57   : > { %947 = vmatprep.subr.mxu0 %v361_v37  ;;  %974 = vmatprep.subr.mxu1 %v397_v38 }
  0x58   : > { %948 = vmatpush3.msra.mxu0 %v345_v39  ;;  %975 = vmatpush3.msra.mxu1 %v381_v40 }
  0x59   : > { %949 = vmatprep.subr.mxu0 %v360_v41  ;;  %976 = vmatprep.subr.mxu1 %v396_v42 }
  0x5a   : > { %950 = vmatpush3.msra.mxu0 %v344_v43  ;;  %629 = vmatprep.mubr.f32.mxu0 %v309_v44 }
  0x5b   : > { %977 = vmatpush3.msra.mxu1 %v380_v45  ;;  %630 = vmatmul.mubr.f32.vlgmr.msra.gmra.mxu0 %v308_v46 }
  0x5c   : > { %978 = vmatprep.subr.mxu1 %v395_v47  ;;  %699 = vmatprep.mubr.f32.mxu1 %v311_v48 }
  0x5d   : > { %979 = vmatpush3.msra.mxu1 %v379_v49  ;;  %1019 = vmatprep.subr.bf16.mxu0 %v1132_v7 }
  0x5e   : > { %980 = vmatprep.subr.mxu1 %v394_v50  ;;  %1023 = vmatprep.mubr.msk.bf16.mxu0 %vm1133_vm1, %v1132_v7 }
  0x5f   : > { %981 = vmatpush3.msra.mxu1 %v378_v51  ;;  %1020 = vmatpush3.bf16.msra.mxu0 %v1068_v57 }
  0x60   : > { %982 = vmatprep.subr.mxu1 %v393_v52  ;;  %1021 = vmatprep.subr.bf16.mxu0 %v1132_v7  ;;  %v863_v7 = vld [vmem:[%s1646_s4] ss:$0 sm:$0xff] }
  0x61   : > { %983 = vmatpush3.msra.mxu1 %v377_v53 }
  0x62   : > { %984 = vmatprep.subr.mxu1 %v392_v54 }
  0x63   : > { %985 = vmatpush3.msra.mxu1 %v376_v55  ;;  %1022 = vmatpush3.bf16.msra.mxu0 %v1069_v58 }
  0x64   : > { %700 = vmatmul.mubr.f32.vlgmr.msra.gmra.mxu1 %v310_v56 }
  0xfa   : > { %v491_v59 = vpop.f32.mrf.mxu0 }
  0xfc   : > { %v1018_v60 = vpop.f32.mrf.mxu0 }
 0x102   : > { %v916_v61 = vpop.f32.mrf.mxu1 }
 0x104   : > { %v917_v63 = vpop.f32.mrf.mxu1 }
 0x105   : > { %v918_v1 = vadd.f32 %v917_v63, %v916_v61 }
 0x107   : > { %v562_v4 = vadd.f32 %v918_v1, %v491_v59 }
 0x11b   : > { %v951_v62 = vpop.f32.mrf.mxu0 }
 0x11d   : > { %v952_v0 = vpop.f32.mrf.mxu0 }
 0x11e   : > { %v953_v2 = vadd.f32 %v952_v0, %v951_v62 }
 0x120   : > { %v632_v6 = vadd.f32 %v953_v2, %v562_v4 }
 0x124   : > { %v986_v3 = vpop.f32.mrf.mxu1 }
 0x126   : > { %v987_v5 = vpop.f32.mrf.mxu1 }
 0x127   : > { %v988_v8 = vadd.f32 %v987_v5, %v986_v3 }
 0x129   : > { %v702_v9 = vadd.f32 %v988_v8, %v632_v6 }
 0x12b   : > { %v712_v10 = vadd.f32 %v863_v7, %v702_v9 }
 0x12d   : > { %v713_v11 = vpack.c.bf16 %v712_v10, %v712_v10 }
 0x12f   : > { %1024 = vmatmul.mubr.msk.bf16.vlgmr.msra.gmra.mxu0 %vm730_vm2, %v713_v11 }
 0x1ef   : > { %v768_v12 = vpop.f32.mrf.mxu0 }
 0x1f0   : > { %774 = vst [vmem:[%s304_s12] sm:$0xff] %v768_v12 }
 0x1f1   : > { %v1025_v13 = vpop.f32.mrf.mxu0 }
 0x1f2   : > { %1083 = shalt.err (!%p1080_p5)
}
 0x1f3   : > { %s1084_s29 = scalar_lea.hbm %s1602_s17, 128  ;;  %s1088_s10 = scalar_lea.hbm %s1648_s6, 384 }
 0x1f4   : > { %p1085_p7 = scmp.ne.s32.totalorder %s1602_s17, %s1084_s29  ;;  %p1089_p11 = scmp.lt.s32.totalorder %s1602_s17, %s1648_s6 }
 0x1f5   : > { %p1090_p12 = scmp.lt.s32.totalorder %s1088_s10, %s1084_s29 }
 0x1f6   : > { %p1086_p9 = pnand %p1085_p7, %p1208_p6 }
 0x1f7   : > { %p1091_p13 = por %p1090_p12, %p1089_p11 }
 0x1f8   : > { %p1087_p10 = pneg %p1086_p9 }
 0x1fa   : > { %p1092_p0 = pnand %p1091_p13, %p1087_p10 }
 0x1fc   : > { %1095 = shalt.err (!%p1092_p0)
}
 0x1fd   : > { %1027 = dma.vmem_to_hbm [thread:$0]  (%p1208_p6), %s1597_s13, 128, %s1602_s17, %s776_s18   ;;  %v771_v14 = vpop.f32.mrf.mxu0 }
 0x1ff   : > { %v1026_v15 = vpop.f32.mrf.mxu0 }
 0x200 PF: > { %p1033_p1 = scmp.ge.s32.totalorder %s1130_s24, 2  ;;  %s801_s14 = sand.u32 1, %s1118_s21  }
 0x201   : > { %s802_s15 = scalar_lea.sflag [#allocation4], %s801_s14 }
 0x202   : > { %p1030_p2 = pnand %p1033_p1, %p1212_p8 }
 0x204   : > { %p1031_p3 = pneg %p1030_p2 }
 0x206   : > { %1113 = dma.done.wait (%p1031_p3), %s802_s15, 128  }
 0x207   : > { %1115 = vsyncadd (%p1031_p3), %s802_s15, 4294967168  ;;  %p16_p6 = scmp.ge.s32.totalorder %s1193_s27, 5   ;;  %s1651_s21 = smov %s1122_s22 }
 0x208   : > { %s1652_s22 = smov %s1126_s23  ;;  %s1653_s23 = smov %s1206_s30 }
 0x209   : > { %s1654_s24 = smov %s1193_s27  ;;  %18 = sbr.rel (!%p16_p6) target bundleno = 3 (0x3), region = 125 }
 0x20e   :  { %807 = vsyncpa [#allocation4], 1 }
 0x20f   :  { %809 = vsyncpa [#allocation4 + $0x1], 1 }

</bundles_post_ra>
